<compile_context>
chip_gen: v5e
topology: v5e:2x2
jax: 0.10.0
libtpu: 0.0.40
codegen_flags: <defaults>
</compile_context>

<pallas_src>
import math

import jax
import jax.numpy as jnp
from jax.experimental import pallas as pl
from jax.experimental.pallas import tpu as pltpu


_SQRT_2_OVER_PI = math.sqrt(2.0 / math.pi)

# ~8 MiB per block => (in + out) x 2 double-buffers = 32 MiB of VMEM in flight.
_TARGET_BLOCK_BYTES = 8 * 1024 * 1024
# Raise the scoped VMEM limit above the v5e default (16 MiB) while staying
# well under v7x's 64 MiB physical VMEM.
_VMEM_LIMIT_BYTES = 48 * 1024 * 1024
# Lane widths tried for the lane-dense relayout (all multiples of 128).
_LANE_CANDIDATES = (4096, 2048, 1024, 512, 256, 128)


def _gelu_kernel(x_ref, o_ref):
    x = x_ref[...]
    xf = x.astype(jnp.float32)
    # 0.5 * x * (1 + tanh(sqrt(2/pi) * x * (1 + 0.044715 * x^2)))
    inner = _SQRT_2_OVER_PI * xf * (1.0 + 0.044715 * (xf * xf))
    y = 0.5 * xf * (1.0 + jnp.tanh(inner))  # tanh -> EUP slot (free vs. VALU)
    o_ref[...] = y.astype(o_ref.dtype)


def _gelu_2d(x2d: jax.Array, tile_rows: int) -> jax.Array:
    rows, lanes = x2d.shape
    grid = (pl.cdiv(rows, tile_rows),)
    return pl.pallas_call(
        _gelu_kernel,
        out_shape=jax.ShapeDtypeStruct((rows, lanes), x2d.dtype),
        grid_spec=pltpu.PrefetchScalarGridSpec(
            num_scalar_prefetch=0,
            grid=grid,
            in_specs=[pl.BlockSpec((tile_rows, lanes), lambda i: (i, 0))],
            out_specs=pl.BlockSpec((tile_rows, lanes), lambda i: (i, 0)),
        ),
        compiler_params=pltpu.CompilerParams(
            dimension_semantics=("parallel",),
            vmem_limit_bytes=_VMEM_LIMIT_BYTES,
        ),
    )(x2d)


def gelu(x: jax.Array) -> jax.Array:
    """Tanh-approximation GELU, elementwise, computed in a Pallas TPU kernel."""
    orig_shape = x.shape
    n = x.size
    if n == 0:
        return x

    # Lane-dense relayout: flatten and re-tile as (rows, L), L a multiple of 128.
    lanes = next((l for l in _LANE_CANDIDATES if n % l == 0), None)

    if lanes is None:
        # TODO(synk): total size not a multiple of 128 -> run as a single full
        # block (block shape == full array dims); fine for small odd shapes.
        out = _gelu_2d(x.reshape(1, n), 1)
        return out.reshape(orig_shape)

    rows = n // lanes
    x2d = x.reshape(rows, lanes)  # free: contiguous metadata reshape, no pad/copy

    bytes_per_row = lanes * jnp.dtype(x.dtype).itemsize
    tile_rows = min(max(1, _TARGET_BLOCK_BYTES // bytes_per_row), rows)
    if tile_rows < rows:
        # Tiled axis must be a multiple of 8 (sublane rule); partial last block
        # is handled by Pallas (out-of-bounds writes are clipped).
        tile_rows = max(8, (tile_rows // 8) * 8)

    out = _gelu_2d(x2d, tile_rows)
    return out.reshape(orig_shape)


def gelu_ref(x: jax.Array) -> jax.Array:
    xf = x.astype(jnp.float32)
    y = 0.5 * xf * (1.0 + jnp.tanh(_SQRT_2_OVER_PI * (xf + 0.044715 * jnp.power(xf, 3.0))))
    return y.astype(x.dtype)


if __name__ == "__main__":
    key = jax.random.PRNGKey(0)

    # BERT-ish small shape: batch=2, seq=8, hidden=32 (total 512 = lane-dense path).
    x = jax.random.normal(key, (2, 8, 32), dtype=jnp.float32)
    y = jax.block_until_ready(gelu(x))
    y_ref = gelu_ref(x)
    assert y.shape == x.shape and y.dtype == x.dtype
    assert jnp.allclose(y, y_ref, atol=1e-5, rtol=1e-5), "f32 mismatch vs reference"

    # bf16 in/out (kernel computes internally in f32, casts on store).
    xb = x.astype(jnp.bfloat16)
    yb = jax.block_until_ready(gelu(xb))
    assert yb.dtype == jnp.bfloat16
    assert jnp.allclose(yb.astype(jnp.float32), gelu_ref(xb).astype(jnp.float32),
                        atol=1e-2, rtol=1e-2), "bf16 mismatch vs reference"

    # Odd total size (105 elements) exercises the single-full-block fallback.
    xo = jax.random.normal(jax.random.PRNGKey(1), (3, 5, 7), dtype=jnp.float32)
    yo = jax.block_until_ready(gelu(xo))
    assert jnp.allclose(yo, gelu_ref(xo), atol=1e-5, rtol=1e-5), "fallback mismatch"

    print("KERNEL_OK")
</pallas_src>

<mosaic_0001>
module attributes {stable_mosaic.version = 11 : i64} {
  func.func @_gelu_kernel(%arg0: i32, %arg1: memref<1x512xf32, #tpu.memory_space<vmem>>, %arg2: memref<1x512xf32, #tpu.memory_space<vmem>>) attributes {dimension_semantics = [#tpu.dimension_semantics<parallel>], iteration_bounds = array<i64: 1>, scalar_prefetch = 0 : i64, scratch_operands = 0 : i64, tpu.core_type = #tpu.core_type<tc>, window_params = [{transform_indices = @transform_0, window_bounds = array<i64: 1, 512>}, {transform_indices = @transform_1, window_bounds = array<i64: 1, 512>}]} {
    %c0 = arith.constant 0 : index
    %c0_0 = arith.constant 0 : index
    %0 = vector.load %arg1[%c0, %c0_0] : memref<1x512xf32, #tpu.memory_space<vmem>>, vector<1x512xf32>
    %cst = arith.constant 0.797884583 : f32
    %1 = vector.broadcast %cst : f32 to vector<1x512xf32>
    %2 = arith.mulf %1, %0 : vector<1x512xf32>
    %3 = arith.mulf %0, %0 : vector<1x512xf32>
    %cst_1 = arith.constant 4.471500e-02 : f32
    %4 = vector.broadcast %cst_1 : f32 to vector<1x512xf32>
    %5 = arith.mulf %4, %3 : vector<1x512xf32>
    %cst_2 = arith.constant 1.000000e+00 : f32
    %6 = vector.broadcast %cst_2 : f32 to vector<1x512xf32>
    %7 = arith.addf %6, %5 : vector<1x512xf32>
    %8 = arith.mulf %2, %7 : vector<1x512xf32>
    %cst_3 = arith.constant 5.000000e-01 : f32
    %9 = vector.broadcast %cst_3 : f32 to vector<1x512xf32>
    %10 = arith.mulf %9, %0 : vector<1x512xf32>
    %11 = math.tanh %8 : vector<1x512xf32>
    %cst_4 = arith.constant 1.000000e+00 : f32
    %12 = vector.broadcast %cst_4 : f32 to vector<1x512xf32>
    %13 = arith.addf %12, %11 : vector<1x512xf32>
    %14 = arith.mulf %10, %13 : vector<1x512xf32>
    %c0_5 = arith.constant 0 : index
    %c0_6 = arith.constant 0 : index
    %15 = vector.load %arg2[%c0_5, %c0_6] : memref<1x512xf32, #tpu.memory_space<vmem>>, vector<1x512xf32>
    tpu.vector_store %arg2[%c0_5, %c0_6], %14 {strides = array<i32>} : memref<1x512xf32, #tpu.memory_space<vmem>>, vector<1x512xf32>,
    return
  }
  func.func @transform_0(%arg0: i32) -> (i32, i32) {
    %c0_i32 = arith.constant 0 : i32
    %c0_i32_0 = arith.constant 0 : i32
    return %arg0, %c0_i32 : i32, i32
  }
  func.func @transform_1(%arg0: i32) -> (i32, i32) {
    %c0_i32 = arith.constant 0 : i32
    %c0_i32_0 = arith.constant 0 : i32
    return %arg0, %c0_i32 : i32, i32
  }
}

</mosaic_0001>

<bundles_post_ra>
// kernel: tpu_custom_call.1
= control target key start
LH: loop header
LB: loop body
LE: loop exit
PB: predicated region body
PF: predicated region fallthrough
CT: control target
= control target key end

     0   :  { %6 = vsyncpa [#allocation3], 0  ;;  %s129_s0 = inlined_call_operand.hbm [shape: f32[1,512], index: 0, kind: input, shape index: {}]   ;;  %s130_s1 = inlined_call_operand.hbm [shape: f32[1,512], index: 1, kind: output, shape index: {}]  }
   0x1   :  { %7 = vsyncpa [#allocation4], 0  ;;  %s13_s8 = sshll.u32 %s129_s0, 4  ;;  %s111_s9 = smov [#allocation2]   ;;  %s14_s8 = int_to_ptr.hbm [resolvable:$true] %s13_s8 }
   0x2   :  { %s15_s10 = sshll.u32 %s111_s9, 4  ;;  %s16_s10 = int_to_ptr.vmem [resolvable:$true] %s15_s10 }
   0x3   :  { %18 = dma.hbm_to_vmem [thread:$0]  %s14_s8, 64, %s16_s10, [#allocation3]  }
   0x4   :  { %107 = dma.done.wait [#allocation3], 64  }
   0x5   :  { %108 = vsyncadd [#allocation3], 4294967232  ;;  %v23_v0 = vld [vmem:[#allocation2] sm:$0xf]  ;;  %v33_v6 = vlaneseq  ;;  %s112_s11 = smov [#allocation5]   ;;  %s45_s14 = sshll.u32 %s130_s1, 4  ;;  %s46_s14 = int_to_ptr.hbm [resolvable:$true] %s45_s14 }
   0x6   :  { %v25_v1 = vmul.f32 %v23_v0, %v23_v0  ;;  %v24_v2 = vmul.f32 0.7978846, %v23_v0  ;;  %v29_v7 = vmul.f32 0.5, %v23_v0  ;;  %s43_s12 = sshll.u32 %s112_s11, 4  ;;  %s44_s12 = int_to_ptr.vmem [resolvable:$true] %s43_s12 }
   0x7   :  { %vm35_vm0 = vcmp.lt.s32.totalorder %v33_v6, 512 }
   0x8   :  { %v26_v3 = vmul.f32 0.044715, %v25_v1 }
   0xa   :  { %v27_v4 = vadd.f32 1.0, %v26_v3 }
   0xc   :  { %v28_v5 = vmul.f32 %v27_v4, %v24_v2 }
   0xe   :  { %57 = vtanh.f32 %v28_v5 }
  0x14   :  { %v58_v8 = vpop.eup %57 }
  0x15   :  { %v31_v9 = vadd.f32 1.0, %v58_v8 }
  0x17   :  { %v32_v10 = vmul.f32 %v31_v9, %v29_v7 }
  0x19   :  { %37 = vst.msk [vmem:[#allocation5] sm:$0xf] %vm35_vm0, %v32_v10 }
  0x1a   :  { %48 = dma.vmem_to_hbm [thread:$0]  %s44_s12, 64, %s46_s14, [#allocation4]  }
  0x1b   :  { %109 = dma.done.wait [#allocation4], 64  }
  0x1c   :  { %110 = vsyncadd [#allocation4], 4294967232 }
  0x1d   :  { %53 = vsyncpa [#allocation3], 1 }
  0x1e   :  { %54 = vsyncpa [#allocation4], 1 }

</bundles_post_ra>
